<compile_context>
chip_gen: v7x
topology: tpu7x:2x2x1
jax: 0.10.0
libtpu: 0.0.40
codegen_flags: <defaults>
</compile_context>

<pallas_src>
import numpy as np
import jax
import jax.numpy as jnp
from jax.experimental import pallas as pl
from jax.experimental.pallas import tpu as pltpu


# ------------------------------------------------------------------
# Parameter construction (numpy glue, replicates disk() without cv2)
# ------------------------------------------------------------------
def _gaussian_kernel_1d(ksize, sigma):
    # OpenCV getGaussianKernel formula for sigma > 0.
    x = np.arange(ksize, dtype=np.float64) - (ksize - 1) * 0.5
    k = np.exp(-(x * x) / (2.0 * sigma * sigma))
    return k / k.sum()


def _gaussian_blur_reflect101(img, ksize, sigma):
    # cv2.GaussianBlur with default BORDER_REFLECT_101, separable kernel.
    kx = _gaussian_kernel_1d(ksize[0], sigma)
    ky = _gaussian_kernel_1d(ksize[1], sigma)
    ph, pw = (ksize[1] - 1) // 2, (ksize[0] - 1) // 2
    H, W = img.shape
    padded = np.pad(img.astype(np.float64), ((ph, ph), (pw, pw)), mode="reflect")
    tmp = np.zeros((H, W + 2 * pw), dtype=np.float64)
    for i in range(ksize[1]):
        tmp += ky[i] * padded[i:i + H, :]
    out = np.zeros((H, W), dtype=np.float64)
    for j in range(ksize[0]):
        out += kx[j] * tmp[:, j:j + W]
    return out.astype(np.float32)


def disk(radius, alias_blur=0.1, kernel_size=10, dtype=np.float32):
    if radius <= kernel_size:
        coords = np.arange(-kernel_size, kernel_size + 1)
        ksize = (3, 3)
    else:
        coords = np.arange(-radius, radius + 1)
        ksize = (5, 5)
    x, y = np.meshgrid(coords, coords)
    aliased_disk = np.asarray(x ** 2 + y ** 2 <= radius ** 2, dtype=dtype)
    aliased_disk /= np.sum(aliased_disk)
    return _gaussian_blur_reflect101(aliased_disk, ksize, alias_blur)


# (radius, alias_blur) severity table from the module.
C_PARAMS = [(1, 0.025), (2, 0.05), (2, 0.1)]


def make_disk_kernel(ks, mag):
    radius, alias = C_PARAMS[mag]
    return disk(radius=radius, alias_blur=alias, kernel_size=(ks - 1) // 2)  # (ks, ks)


def _reflect_index(n, pad):
    """PyTorch-'reflect' (no edge dup) source index for positions -pad .. n-1+pad."""
    t = np.arange(-pad, n + pad)
    t = np.where(t < 0, -t, t)
    t = np.where(t >= n, 2 * (n - 1) - t, t)
    return t  # length n + 2*pad; entry k maps padded pos (k - pad) -> source index


def make_conv_operator(k2d, H, W):
    """Dense (H*W, H*W) operator folding the ks x ks taps AND the reflect padding
    of both spatial axes of the depthwise conv into a single matrix:

        out_flat[n, ho*W + wo] = sum_p x_flat[n, p] * T[p, ho*W + wo]

    (demo-scale path; see the W-tiling TODO at the top for real image sizes).
    """
    KS = k2d.shape[0]
    pad = (KS - 1) // 2
    assert H > pad and W > pad, "reflect padding requires H, W > (ks-1)//2"
    k64 = k2d.astype(np.float64)
    ridx_h = _reflect_index(H, pad)
    ridx_w = _reflect_index(W, pad)
    out_flat = np.arange(H * W)
    ho = out_flat // W
    wo = out_flat % W
    T = np.zeros((H * W, H * W), dtype=np.float64)
    for i in range(KS):
        hin = ridx_h[ho + i]                       # source row per output pixel
        for j in range(KS):
            win = ridx_w[wo + j]                   # source col per output pixel
            np.add.at(T, (hin * W + win, out_flat), k64[i, j])
    return jnp.asarray(T, dtype=jnp.float32)


# ------------------------------------------------------------------
# Block-size selection (VMEM budget, feedback-aware)
# ------------------------------------------------------------------
def _round_up(x, m):
    return (x + m - 1) // m * m


def _vreg_padded_bytes(shape, itemsize=4):
    """VMEM footprint of an f32 buffer after (8, 128) tile padding."""
    lead = 1
    for d in shape[:-2]:
        lead *= d
    return lead * _round_up(shape[-2], 8) * _round_up(shape[-1], 128) * itemsize


def _pick_images_per_block(N, HW, budget_bytes):
    """Largest images-per-grid-step whose VMEM working set fits budget_bytes,
    capped so the grid has >= 2 steps (keeps both v7x TensorCores busy;
    v5e/v6e are single-TC and simply pipeline the extra step).

    budget_bytes default is conservative for v7x's 64 MiB VMEM; on v5e/v6e
    (128 MiB physical) it can be raised toward ~48 MiB for larger blocks.
    """
    weight = 2 * _vreg_padded_bytes((HW, HW))          # resident operator (x2: buffering safety)
    assert weight + 4 * _vreg_padded_bytes((1, HW)) <= budget_bytes, (
        "dense (H*W, H*W) operator does not fit the VMEM budget; "
        "use the W-tiled Toeplitz path (see TODO at top of file)")
    best = 1
    for tn in range(1, N + 1):
        use = weight
        use += 2 * _vreg_padded_bytes((tn, HW))        # input block, double-buffered
        use += 2 * _vreg_padded_bytes((tn, HW))        # output block, double-buffered
        if use <= budget_bytes:
            best = tn
    if N >= 2:
        best = min(best, N // 2)                       # >= 2 grid steps (v7x megacore)
    return max(best, 1)


# ------------------------------------------------------------------
# Pallas kernel: one lane-dense MXU matmul per grid step
# ------------------------------------------------------------------
def _defocus_kernel(x_ref, t_ref, o_ref):
    # x_ref: (1, TN, H*W) raw pixels 0..255;  t_ref: (H*W, H*W);  o_ref: (1, TN, H*W)
    y = jnp.dot(x_ref[0], t_ref[...], preferred_element_type=jnp.float32)
    # floor(clamp(conv(img/255), 0, 1) * 255) == floor(clip(conv(img), 0, 255))
    o_ref[0] = jnp.floor(jnp.clip(y, 0.0, 255.0))


def _build_call(G, TN, HW, single_buffer_weights):
    if single_buffer_weights:
        # Constant-index operator block: never changes -> one buffer is enough.
        w_spec = pl.BlockSpec((HW, HW), lambda g: (0, 0), pipeline_mode=pl.Buffered(1))
    else:
        w_spec = pl.BlockSpec((HW, HW), lambda g: (0, 0))
    return pl.pallas_call(
        _defocus_kernel,
        out_shape=jax.ShapeDtypeStruct((G, TN, HW), jnp.float32),
        grid_spec=pltpu.PrefetchScalarGridSpec(
            num_scalar_prefetch=0,
            grid=(G,),
            in_specs=[pl.BlockSpec((1, TN, HW), lambda g: (g, 0, 0)), w_spec],
            out_specs=pl.BlockSpec((1, TN, HW), lambda g: (g, 0, 0)),
        ),
        compiler_params=pltpu.CompilerParams(
            dimension_semantics=("parallel",),
            vmem_limit_bytes=48 * 1024 * 1024,     # <= 64 MiB v7x VMEM; fine on v5e/v6e
        ),
    )


def defocus_blur(img, conv_op, budget_bytes=20 * 1024 * 1024):
    """img: (B, C, H, W) float pixel values in [0, 255]; conv_op: (H*W, H*W)."""
    B, C, H, W = img.shape
    HW = H * W
    assert conv_op.shape == (HW, HW)
    N = B * C
    TN = _pick_images_per_block(N, HW, budget_bytes)
    G = int(pl.cdiv(N, TN))
    n_pad = G * TN - N

    # Free reshape: the same depthwise filter applies to every channel, so (B, C)
    # collapses to one batch axis; spatial dims flatten to a lane-dense (H*W)-wide
    # last axis for both input and output BlockSpecs (unmasked 128-lane stores).
    x = img.astype(jnp.float32).reshape(N, HW)
    if n_pad:
        x = jnp.concatenate([x, jnp.zeros((n_pad, HW), jnp.float32)], axis=0)
    x = x.reshape(G, TN, HW)

    try:
        out = _build_call(G, TN, HW, single_buffer_weights=True)(x, conv_op)
        out = jax.block_until_ready(out)
    except Exception:
        # pipeline_mode unsupported in this JAX version -> default double buffering
        # (weight is resident anyway thanks to its constant block index).
        out = _build_call(G, TN, HW, single_buffer_weights=False)(x, conv_op)

    out = out.reshape(G * TN, HW)[:N]
    return out.reshape(B, C, H, W)


# ------------------------------------------------------------------
# Pure-JAX reference (for a coarse sanity check only)
# ------------------------------------------------------------------
def defocus_blur_ref(img, weights):
    B, C, H, W = img.shape
    ks = weights.shape[-1]
    pad = (ks - 1) // 2
    x = jnp.pad(img.astype(jnp.float32) / 255.0,
                ((0, 0), (0, 0), (pad, pad), (pad, pad)), mode="reflect")
    w = weights[:, None, :, :]                    # (C, 1, ks, ks) OIHW depthwise
    y = jax.lax.conv_general_dilated(
        x, w, window_strides=(1, 1), padding="VALID",
        dimension_numbers=("NCHW", "OIHW", "NCHW"), feature_group_count=C)
    return jnp.floor(jnp.clip(y, 0.0, 1.0) * 255.0)


if __name__ == "__main__":
    B, C, H, W = 2, 4, 16, 16
    KS = 21
    MAG = 1  # deterministic severity pick (radius=2, alias_blur=0.05); prob=1.0 path

    key = jax.random.PRNGKey(0)
    img = jax.random.uniform(key, (B, C, H, W), dtype=jnp.float32,
                             minval=0.0, maxval=255.0)

    k2d = make_disk_kernel(KS, MAG)               # (KS, KS) disk filter
    conv_op = make_conv_operator(k2d, H, W)       # (H*W, H*W) reflect+taps operator

    out = defocus_blur(img, conv_op)
    out = jax.block_until_ready(out)

    w_ref = jnp.asarray(np.repeat(k2d[None].astype(np.float32), C, axis=0))
    ref = jax.block_until_ready(defocus_blur_ref(img, w_ref))

    assert out.shape == (B, C, H, W) and out.dtype == jnp.float32
    # atol=1.0 tolerates floor() flips at exact-integer boundaries (the /255,*255
    # rescale fold and the different accumulation order are exact in real
    # arithmetic; fp rounding can flip floor() only at integers).
    assert np.max(np.abs(np.asarray(out) - np.asarray(ref))) <= 1.0

    print("KERNEL_OK")
</pallas_src>

<mosaic_0001>
module attributes {stable_mosaic.version = 11 : i64} {
  func.func @_defocus_kernel(%arg0: i32, %arg1: memref<1x4x256xf32, #tpu.memory_space<vmem>>, %arg2: memref<256x256xf32, #tpu.memory_space<vmem>>, %arg3: memref<1x4x256xf32, #tpu.memory_space<vmem>>) attributes {dimension_semantics = [#tpu.dimension_semantics<parallel>], iteration_bounds = array<i64: 2>, scalar_prefetch = 0 : i64, scratch_operands = 0 : i64, tpu.core_type = #tpu.core_type<tc>, window_params = [{transform_indices = @transform_0, window_bounds = array<i64: 1, 4, 256>}, {pipeline_mode = #tpu.pipeline_mode<synchronous>, transform_indices = @transform_1, window_bounds = array<i64: 256, 256>}, {transform_indices = @transform_2, window_bounds = array<i64: 1, 4, 256>}]} {
    %c0 = arith.constant 0 : index
    %c0_0 = arith.constant 0 : index
    %c0_1 = arith.constant 0 : index
    %0 = vector.load %arg1[%c0, %c0_0, %c0_1] : memref<1x4x256xf32, #tpu.memory_space<vmem>>, vector<1x4x256xf32>
    %1 = vector.shape_cast %0 : vector<1x4x256xf32> to vector<4x256xf32>
    %c0_2 = arith.constant 0 : index
    %c0_3 = arith.constant 0 : index
    %2 = vector.load %arg2[%c0_2, %c0_3] : memref<256x256xf32, #tpu.memory_space<vmem>>, vector<256x256xf32>
    %cst = arith.constant dense<0.000000e+00> : vector<4x256xf32>
    %3 = tpu.matmul %1, %2, %cst {dimension_numbers = #tpu.dot_dimension_numbers<[1], [0], [0], [1], [0, 0, 1, 1], [], []>} : vector<4x256xf32>, vector<256x256xf32>, vector<4x256xf32> -> vector<4x256xf32>
    %cst_4 = arith.constant 0.000000e+00 : f32
    %cst_5 = arith.constant 2.550000e+02 : f32
    %4 = vector.broadcast %cst_4 : f32 to vector<4x256xf32>
    %5 = arith.maximumf %4, %3 : vector<4x256xf32>
    %6 = vector.broadcast %cst_5 : f32 to vector<4x256xf32>
    %7 = arith.minimumf %6, %5 : vector<4x256xf32>
    %8 = math.floor %7 : vector<4x256xf32>
    %c0_6 = arith.constant 0 : index
    %c0_7 = arith.constant 0 : index
    %c0_8 = arith.constant 0 : index
    %9 = vector.load %arg3[%c0_6, %c0_7, %c0_8] : memref<1x4x256xf32, #tpu.memory_space<vmem>>, vector<1x4x256xf32>
    %10 = vector.shape_cast %9 : vector<1x4x256xf32> to vector<4x256xf32>
    %11 = vector.shape_cast %8 : vector<4x256xf32> to vector<1x4x256xf32>
    tpu.vector_store %arg3[%c0_6, %c0_7, %c0_8], %11 {strides = array<i32>} : memref<1x4x256xf32, #tpu.memory_space<vmem>>, vector<1x4x256xf32>,
    return
  }
  func.func @transform_0(%arg0: i32) -> (i32, i32, i32) {
    %c0_i32 = arith.constant 0 : i32
    %c0_i32_0 = arith.constant 0 : i32
    %c0_i32_1 = arith.constant 0 : i32
    return %arg0, %c0_i32, %c0_i32_0 : i32, i32, i32
  }
  func.func @transform_1(%arg0: i32) -> (i32, i32) {
    %c0_i32 = arith.constant 0 : i32
    %c0_i32_0 = arith.constant 0 : i32
    %c0_i32_1 = arith.constant 0 : i32
    return %c0_i32, %c0_i32_0 : i32, i32
  }
  func.func @transform_2(%arg0: i32) -> (i32, i32, i32) {
    %c0_i32 = arith.constant 0 : i32
    %c0_i32_0 = arith.constant 0 : i32
    %c0_i32_1 = arith.constant 0 : i32
    return %arg0, %c0_i32, %c0_i32_0 : i32, i32, i32
  }
}

module attributes {stable_mosaic.version = 11 : i64} {
  func.func @_defocus_kernel(%arg0: i32, %arg1: memref<1x4x256xf32, #tpu.memory_space<vmem>>, %arg2: memref<256x256xf32, #tpu.memory_space<vmem>>, %arg3: memref<1x4x256xf32, #tpu.memory_space<vmem>>) attributes {dimension_semantics = [#tpu.dimension_semantics<parallel>], iteration_bounds = array<i64: 2>, scalar_prefetch = 0 : i64, scratch_operands = 0 : i64, tpu.core_type = #tpu.core_type<tc>, window_params = [{transform_indices = @transform_0, window_bounds = array<i64: 1, 4, 256>}, {pipeline_mode = #tpu.pipeline_mode<synchronous>, transform_indices = @transform_1, window_bounds = array<i64: 256, 256>}, {transform_indices = @transform_2, window_bounds = array<i64: 1, 4, 256>}]} {
    %c0 = arith.constant 0 : index
    %c0_0 = arith.constant 0 : index
    %c0_1 = arith.constant 0 : index
    %0 = vector.load %arg1[%c0, %c0_0, %c0_1] : memref<1x4x256xf32, #tpu.memory_space<vmem>>, vector<1x4x256xf32>
    %1 = vector.shape_cast %0 : vector<1x4x256xf32> to vector<4x256xf32>
    %c0_2 = arith.constant 0 : index
    %c0_3 = arith.constant 0 : index
    %2 = vector.load %arg2[%c0_2, %c0_3] : memref<256x256xf32, #tpu.memory_space<vmem>>, vector<256x256xf32>
    %cst = arith.constant dense<0.000000e+00> : vector<4x256xf32>
    %3 = tpu.matmul %1, %2, %cst {dimension_numbers = #tpu.dot_dimension_numbers<[1], [0], [0], [1], [0, 0, 1, 1], [], []>} : vector<4x256xf32>, vector<256x256xf32>, vector<4x256xf32> -> vector<4x256xf32>
    %cst_4 = arith.constant 0.000000e+00 : f32
    %cst_5 = arith.constant 2.550000e+02 : f32
    %4 = vector.broadcast %cst_4 : f32 to vector<4x256xf32>
    %5 = arith.maximumf %4, %3 : vector<4x256xf32>
    %6 = vector.broadcast %cst_5 : f32 to vector<4x256xf32>
    %7 = arith.minimumf %6, %5 : vector<4x256xf32>
    %8 = math.floor %7 : vector<4x256xf32>
    %c0_6 = arith.constant 0 : index
    %c0_7 = arith.constant 0 : index
    %c0_8 = arith.constant 0 : index
    %9 = vector.load %arg3[%c0_6, %c0_7, %c0_8] : memref<1x4x256xf32, #tpu.memory_space<vmem>>, vector<1x4x256xf32>
    %10 = vector.shape_cast %9 : vector<1x4x256xf32> to vector<4x256xf32>
    %11 = vector.shape_cast %8 : vector<4x256xf32> to vector<1x4x256xf32>
    tpu.vector_store %arg3[%c0_6, %c0_7, %c0_8], %11 {strides = array<i32>} : memref<1x4x256xf32, #tpu.memory_space<vmem>>, vector<1x4x256xf32>,
    return
  }
  func.func @transform_0(%arg0: i32) -> (i32, i32, i32) {
    %c0_i32 = arith.constant 0 : i32
    %c0_i32_0 = arith.constant 0 : i32
    %c0_i32_1 = arith.constant 0 : i32
    return %arg0, %c0_i32, %c0_i32_0 : i32, i32, i32
  }
  func.func @transform_1(%arg0: i32) -> (i32, i32) {
    %c0_i32 = arith.constant 0 : i32
    %c0_i32_0 = arith.constant 0 : i32
    %c0_i32_1 = arith.constant 0 : i32
    return %c0_i32, %c0_i32_0 : i32, i32
  }
  func.func @transform_2(%arg0: i32) -> (i32, i32, i32) {
    %c0_i32 = arith.constant 0 : i32
    %c0_i32_0 = arith.constant 0 : i32
    %c0_i32_1 = arith.constant 0 : i32
    return %arg0, %c0_i32, %c0_i32_0 : i32, i32, i32
  }
}

</mosaic_0001>

<bundles_post_ra>
// kernel: tpu_custom_call.1
= control target key start
LH: loop header
LB: loop body
LE: loop exit
PB: predicated region body
PF: predicated region fallthrough
CT: control target
= control target key end

     0   :  { %7 = vsyncpa [#allocation3], 0  ;;  %s920_s0 = inlined_call_operand.hbm [shape: f32[2,4,256], index: 0, kind: input, shape index: {}]   ;;  %s921_s1 = inlined_call_operand.hbm [shape: f32[256,256], index: 1, kind: input, shape index: {}]   ;;  %s922_s2 = inlined_call_operand.hbm [shape: f32[2,4,256], index: 2, kind: output, shape index: {}]  }
   0x1   :  { %9 = vsyncpa [#allocation3 + $0x1], 0 }
   0x2   :  { %10 = vsyncpa [#allocation6], 0 }
   0x3   :  { %11 = vsyncpa [#allocation4], 0 }
   0x4   :  { %13 = vsyncpa [#allocation4 + $0x1], 0  ;;  %s712_s9 = smov 0   ;;  %s714_s10 = smov 0  }
   0x5   :  { %s716_s11 = smov 0   ;;  %s718_s12 = smov 0  }
   0x6 LB: > { %s733_s13 = sadd.s32 4294967295, %s690_s12   ;;  %s420_s14 = sadd.s32 4294967294, %s690_s12   ;;  %s690_s12 = sphi %s718_s12, %s942_s12   ;;  %s686_s11 = sphi %s716_s11, %s941_s11   ;;  %s682_s10 = sphi %s714_s10, %s940_s10   ;;  %s678_s9 = sphi %s712_s9, %s939_s9  }
   0x7   : > { %p39_p0 = scmp.ne.s32.totalorder %s682_s10, %s678_s9  ;;  %p923_p1 = scmp.eq.s32.totalorder %s733_s13, 0 }
   0x8   : > { %p90_p3 = scmp.eq.s32.totalorder %s420_s14, 1  ;;  %p421_p5 = scmp.ge.s32.totalorder %s690_s12, 1 }
   0x9   : > { %p742_p4 = por %p923_p1, %p39_p0  ;;  %p97_p7 = scmp.lt.s32.totalorder %s690_s12, 3 }
   0xa   : > { %p747_p6 = por %p90_p3, %p39_p0  ;;  %s692_s18 = smov [#allocation5]  }
   0xb   : > { %s926_s15 = scalar_select %p742_p4, 1, 0 }
   0xc   : > { %s927_s16 = scalar_select %p747_p6, 1, 0 }
   0xd   : > { %p752_p8 = pnand %p421_p5, %p97_p7  ;;  %s109_s19 = sshll.u32 %s692_s18, 4  ;;  %s756_s19 = int_to_ptr.vmem [resolvable:$true] %s109_s19 }
   0xe   : > { %s768_s21 = sadd.s32 1, %s690_s12   ;;  %s26_s22 = sadd.s32 1, %s686_s11 }
   0xf   : > { %s928_s17 = scalar_select %p752_p8, 1, 0 }
  0x10   : > { %p510_p9 = pneg %p752_p8  ;;  %s23_s23 = ssub.s32 %s690_s12, %s768_s21 }
  0x11   : > { %s562_s26 = scalar_lea.hbm %s921_s1, 8192 }
  0x12   : > { %p763_p11 = pnand %p510_p9, %p923_p1  ;;  %p563_p12 = scmp.ne.s32.totalorder %s921_s1, %s562_s26 }
  0x13   : > { %p569_p5 = scmp.lt.u32.totalorder %s562_s26, %s921_s1 }
  0x14   : > { %p564_p13 = pneg %p763_p11 }
  0x16   : > { %p565_p0 = pnand %p564_p13, %p563_p12 }
  0x18   : > { %p566_p3 = pneg %p565_p0 }
  0x1a   : > { %p571_p7 = pnand %p569_p5, %p566_p3 }
  0x1c   : > { %574 = shalt.err (!%p571_p7)
}
  0x1d   : > { %s575_s3 = scalar_lea.vmem %s756_s19, 8192  ;;  %p583_p2 = scmp.lt.s32.totalorder %s756_s19, %s756_s19 }
  0x1e   : > { %p576_p9 = scmp.ne.s32.totalorder %s756_s19, %s575_s3  ;;  %p584_p6 = scmp.lt.s32.totalorder %s575_s3, %s575_s3 }
  0x20   : > { %p578_p10 = pnand %p576_p9, %p564_p13  ;;  %p585_p4 = por %p584_p6, %p583_p2 }
  0x22   : > { %p579_p1 = pneg %p578_p10 }
  0x24   : > { %p586_p8 = pnand %p585_p4, %p579_p1 }
  0x26   : > { %589 = shalt.err (!%p586_p8)
}
  0x27   : > { %s693_s4 = smov 256   ;;  %s694_s5 = smov 16  }
  0x28   : > { %513 = dma.hbm_to_vmem [thread:$0]  (!%p763_p11), %s921_s1, 8192, %s756_s19, [#allocation6], %s693_s4, %s693_s4, %s694_s5  }
  0x29   : > { %p24_p2 = scmp.eq.s32.totalorder %s23_s23, 0  ;;  %p33_p1 = scmp.ne.s32.totalorder %s686_s11, %s682_s10 }
  0x2a   : > { %p34_p4 = scmp.eq.s32.totalorder %s690_s12, 0  ;;  %p523_p6 = scmp.lt.s32.totalorder %s690_s12, 2 }
  0x2b   : > { %s799_s8 = scalar_select %p24_p2, %s686_s11, %s26_s22  }
  0x2c   : > { %p35_p8 = por %p34_p4, %p33_p1  ;;  %p930_p10 = scmp.eq.s32.totalorder %s733_s13, 1 }
  0x2d   : > { %s123_s18 = sand.u32 1, %s686_s11   ;;  %s436_s24 = sshll.u32 %s690_s12, 7 }
  0x2e   : > { %p803_p12 = por %p930_p10, %p33_p1  ;;  %s424_s25 = sshll.u32 %s123_s18, 3 }
  0x2f   : > { %s812_s27 = scalar_lea.hbm %s920_s0, %s436_s24  ;;  %s127_s19 = scalar_lea.vmem [#allocation2], %s424_s25 }
  0x30   : > { %s135_s22 = sshll.u32 %s127_s19, 4  ;;  %p814_p11 = pnand %p523_p6, %p35_p8  ;;  %s818_s22 = int_to_ptr.vmem [resolvable:$true] %s135_s22 }
  0x31   : > { %s124_s28 = scalar_lea.sflag [#allocation3], %s123_s18  ;;  %s590_s29 = scalar_lea.hbm %s812_s27, 128 }
  0x32   : > { %p591_p13 = scmp.ne.s32.totalorder %s812_s27, %s590_s29  ;;  %p592_p0 = pneg %p814_p11 }
  0x33   : > { %s595_s4 = scalar_lea.hbm %s920_s0, 256  ;;  %p596_p7 = scmp.lt.u32.totalorder %s812_s27, %s920_s0 }
  0x34   : > { %p593_p3 = pnand %p592_p0, %p591_p13  ;;  %p597_p9 = scmp.lt.u32.totalorder %s595_s4, %s590_s29 }
  0x35   : > { %p599_p1 = scmp.lt.u32.totalorder %s590_s29, %s812_s27 }
  0x36   : > { %p594_p5 = pneg %p593_p3  ;;  %p598_p2 = por %p597_p9, %p596_p7 }
  0x38   : > { %p600_p4 = por %p599_p1, %p598_p2 }
  0x3a   : > { %p601_p6 = pnand %p600_p4, %p594_p5 }
  0x3c   : > { %604 = shalt.err (!%p601_p6)
}
  0x3d   : > { %s605_s7 = scalar_lea.vmem %s818_s22, 128  ;;  %s695_s18 = smov [#allocation2]  }
  0x3e   : > { %p606_p8 = scmp.ne.s32.totalorder %s818_s22, %s605_s7  ;;  %s610_s24 = sshll.u32 %s695_s18, 4  ;;  %s611_s24 = int_to_ptr.vmem [resolvable:$false] %s610_s24 }
  0x3f   : > { %s612_s25 = scalar_lea.vmem %s611_s24, 256  ;;  %p613_p3 = scmp.lt.s32.totalorder %s818_s22, %s611_s24 }
  0x40   : > { %p608_p10 = pnand %p606_p8, %p592_p0  ;;  %p614_p7 = scmp.lt.s32.totalorder %s612_s25, %s605_s7 }
  0x42   : > { %p609_p13 = pneg %p608_p10  ;;  %p615_p9 = por %p614_p7, %p613_p3 }
  0x44   : > { %p616_p2 = pnand %p615_p9, %p609_p13 }
  0x46   : > { %619 = shalt.err (!%p616_p2)
}
  0x47   : > { %517 = dma.hbm_to_vmem [thread:$0]  (!%p814_p11), %s812_s27, 128, %s818_s22, %s124_s28  }
  0x48   : > { %p933_p5 = scmp.ne.s32.totalorder %s928_s17, 0 }
  0x49   : > { %s848_s20 = sand.u32 (!%p933_p5), 1, %s682_s10   ;;  %p934_p0 = scmp.ne.s32.totalorder (!%p933_p5), %s926_s15, 0 }
  0x4a   : > { %144 = sbr.rel (%p933_p5) target bundleno = 387 (0x183), region = 28  ;;  %s428_s26 = sshll.u32 (!%p933_p5), %s848_s20, 3 }
  0x4b   : > { %s147_s19 = scalar_lea.sflag (!%p933_p5), [#allocation3], %s848_s20  ;;  %s854_s29 = scalar_lea.vmem (!%p933_p5), [#allocation2], %s428_s26 }
  0x51   : > { %665 = dma.done.wait (%p934_p0), %s147_s19, 128  }
  0x52   : > { %667 = vsyncadd (%p934_p0), %s147_s19, 4294967168  ;;  %p935_p11 = scmp.eq.s32.totalorder %s733_s13, 0 }
  0x54   : > { %669 = dma.done.wait (%p935_p11), [#allocation6], 8192   ;;  %p936_p1 = pmov %p935_p11 }
  0x55   : > { %v177_v0 = vld [vmem:[#allocation5 + $0x8] sm:$0xff]  ;;  %v179_v1 = vld [vmem:[#allocation5 + $0x18] sm:$0xff]  ;;  %v176_v2 = vld [vmem:[#allocation5] sm:$0xff]  ;;  %s437_s15 = sshll.u32 %s733_s13, 7  ;;  %s174_s17 = scalar_lea.vmem [#allocation7], %s428_s26 }
  0x56   : > { %671 = vsyncadd (%p936_p1), [#allocation6], 4294959104  ;;  %v438_v3 = vpack.c.bf16 %v179_v1, %v177_v0  ;;  %v178_v4 = vld [vmem:[#allocation5 + $0x10] sm:$0xff]  ;;  %v181_v5 = vld [vmem:[#allocation5 + $0x28] sm:$0xff]  ;;  %s340_s27 = sshll.u32 %s174_s17, 4  ;;  %s876_s28 = scalar_lea.hbm %s922_s2, %s437_s15  ;;  %s878_s27 = int_to_ptr.vmem [resolvable:$true] %s340_s27 }
  0x57   : > { %v183_v6 = vld [vmem:[#allocation5 + $0x38] sm:$0xff]  ;;  %v440_v7 = vpack.c.bf16 %v178_v4, %v176_v2  ;;  %v180_v9 = vld [vmem:[#allocation5 + $0x20] sm:$0xff]  ;;  %v182_v10 = vld [vmem:[#allocation5 + $0x30] sm:$0xff]  ;;  %s326_s30 = scalar_lea.sflag [#allocation4], %s848_s20  ;;  %s620_s3 = scalar_lea.vmem %s878_s27, 128 }
  0x58   : > { %v442_v8 = vpack.c.bf16 %v183_v6, %v181_v5  ;;  %v185_v11 = vld [vmem:[#allocation5 + $0x48] sm:$0xff]  ;;  %439 = vmatprep.subr.bf16.mxu0 %v438_v3  ;;  %v187_v12 = vld [vmem:[#allocation5 + $0x58] sm:$0xff]  ;;  %v444_v13 = vpack.c.bf16 %v182_v10, %v180_v9  ;;  %v184_v15 = vld [vmem:[#allocation5 + $0x40] sm:$0xff]  ;;  %p621_p4 = scmp.ne.s32.totalorder %s878_s27, %s620_s3  ;;  %s696_s13 = smov [#allocation7]  }
  0x59   : > { %441 = vmatpush1.bf16.msra.mxu0 %v440_v7  ;;  %v446_v14 = vpack.c.bf16 %v187_v12, %v185_v11  ;;  %v186_v16 = vld [vmem:[#allocation5 + $0x50] sm:$0xff]  ;;  %v189_v17 = vld [vmem:[#allocation5 + $0x68] sm:$0xff]  ;;  %v191_v18 = vld [vmem:[#allocation5 + $0x78] sm:$0xff]  ;;  %s624_s4 = sshll.u32 %s696_s13, 4  ;;  %s625_s4 = int_to_ptr.vmem [resolvable:$false] %s624_s4 }
  0x5a   : > { %443 = vmatprep.subr.bf16.mxu0 %v442_v8  ;;  %v448_v19 = vpack.c.bf16 %v186_v16, %v184_v15  ;;  %v450_v20 = vpack.c.bf16 %v191_v18, %v189_v17  ;;  %v188_v21 = vld [vmem:[#allocation5 + $0x60] sm:$0xff]  ;;  %v190_v22 = vld [vmem:[#allocation5 + $0x70] sm:$0xff]  ;;  %v193_v23 = vld [vmem:[#allocation5 + $0x88] sm:$0xff]  ;;  %p622_p6 = pnand %p621_p4, %p803_p12  ;;  %s626_s5 = scalar_lea.vmem %s625_s4, 256 }
  0x5b   : > { %v195_v24 = vld [vmem:[#allocation5 + $0x98] sm:$0xff]  ;;  %v452_v25 = vpack.c.bf16 %v190_v22, %v188_v21  ;;  %v192_v27 = vld [vmem:[#allocation5 + $0x80] sm:$0xff]  ;;  %v194_v28 = vld [vmem:[#allocation5 + $0x90] sm:$0xff]  ;;  %p627_p10 = scmp.lt.s32.totalorder %s878_s27, %s625_s4  ;;  %p628_p13 = scmp.lt.s32.totalorder %s626_s5, %s620_s3 }
  0x5c   : > { %v454_v26 = vpack.c.bf16 %v195_v24, %v193_v23  ;;  %v197_v29 = vld [vmem:[#allocation5 + $0xa8] sm:$0xff]  ;;  %v199_v30 = vld [vmem:[#allocation5 + $0xb8] sm:$0xff]  ;;  %v456_v31 = vpack.c.bf16 %v194_v28, %v192_v27  ;;  %v196_v33 = vld [vmem:[#allocation5 + $0xa0] sm:$0xff]  ;;  %p623_p8 = pneg %p622_p6 }
  0x5d   : > { %445 = vmatpush1.bf16.msra.mxu0 %v444_v13  ;;  %v458_v32 = vpack.c.bf16 %v199_v30, %v197_v29  ;;  %v198_v34 = vld [vmem:[#allocation5 + $0xb0] sm:$0xff]  ;;  %v201_v35 = vld [vmem:[#allocation5 + $0xc8] sm:$0xff]  ;;  %v203_v36 = vld [vmem:[#allocation5 + $0xd8] sm:$0xff]  ;;  %p629_p3 = por %p628_p13, %p627_p10 }
  0x5e   : > { %447 = vmatprep.subr.bf16.mxu0 %v446_v14  ;;  %v460_v37 = vpack.c.bf16 %v198_v34, %v196_v33  ;;  %v462_v38 = vpack.c.bf16 %v203_v36, %v201_v35  ;;  %v200_v39 = vld [vmem:[#allocation5 + $0xc0] sm:$0xff]  ;;  %v202_v40 = vld [vmem:[#allocation5 + $0xd0] sm:$0xff]  ;;  %v205_v42 = vld [vmem:[#allocation5 + $0xe8] sm:$0xff] }
  0x5f   : > { %v865_v41 = vld [vmem:[%s854_s29] sm:$0xff]  ;;  %v464_v45 = vpack.c.bf16 %v202_v40, %v200_v39  ;;  %v204_v47 = vld [vmem:[#allocation5 + $0xe0] sm:$0xff]  ;;  %v209_v49 = vld [vmem:[#allocation5 + $0x108] sm:$0xff]  ;;  %p630_p7 = pnand %p629_p3, %p623_p8 }
  0x60   : > { %v207_v43 = vld [vmem:[#allocation5 + $0xf8] sm:$0xff]  ;;  %v241_v44 = vcombine.high %v865_v41, %v865_v41  ;;  %v206_v48 = vld [vmem:[#allocation5 + $0xf0] sm:$0xff]  ;;  %v208_v53 = vld [vmem:[#allocation5 + $0x100] sm:$0xff] }
  0x61   : > { %449 = vmatpush1.bf16.msra.mxu0 %v448_v19  ;;  %v466_v46 = vpack.c.bf16 %v207_v43, %v205_v42  ;;  %v211_v50 = vld [vmem:[#allocation5 + $0x118] sm:$0xff]  ;;  %v468_v51 = vpack.c.bf16 %v206_v48, %v204_v47  ;;  %v210_v54 = vld [vmem:[#allocation5 + $0x110] sm:$0xff]  ;;  %v213_v55 = vld [vmem:[#allocation5 + $0x128] sm:$0xff] }
  0x62   : > { %451 = vmatprep.subr.bf16.mxu0 %v450_v20  ;;  %307 = vmatprep.mubr.f32.mxu0 %v241_v44  ;;  %v470_v52 = vpack.c.bf16 %v211_v50, %v209_v49  ;;  %v215_v56 = vld [vmem:[#allocation5 + $0x138] sm:$0xff]  ;;  %v472_v57 = vpack.c.bf16 %v210_v54, %v208_v53  ;;  %v212_v59 = vld [vmem:[#allocation5 + $0x120] sm:$0xff]  ;;  %v214_v60 = vld [vmem:[#allocation5 + $0x130] sm:$0xff] }
  0x63   : > { %v474_v58 = vpack.c.bf16 %v215_v56, %v213_v55  ;;  %v217_v61 = vld [vmem:[#allocation5 + $0x148] sm:$0xff]  ;;  %v219_v62 = vld [vmem:[#allocation5 + $0x158] sm:$0xff]  ;;  %v476_v63 = vpack.c.bf16 %v214_v60, %v212_v59  ;;  %v216_v1 = vld [vmem:[#allocation5 + $0x140] sm:$0xff] }
  0x64   : > { %v478_v0 = vpack.c.bf16 %v219_v62, %v217_v61  ;;  %v218_v2 = vld [vmem:[#allocation5 + $0x150] sm:$0xff]  ;;  %v221_v3 = vld [vmem:[#allocation5 + $0x168] sm:$0xff]  ;;  %v223_v4 = vld [vmem:[#allocation5 + $0x178] sm:$0xff] }
  0x65   : > { %453 = vmatpush1.bf16.msra.mxu0 %v452_v25  ;;  %v480_v5 = vpack.c.bf16 %v218_v2, %v216_v1  ;;  %v482_v6 = vpack.c.bf16 %v223_v4, %v221_v3  ;;  %v220_v7 = vld [vmem:[#allocation5 + $0x160] sm:$0xff]  ;;  %v222_v8 = vld [vmem:[#allocation5 + $0x170] sm:$0xff]  ;;  %v225_v9 = vld [vmem:[#allocation5 + $0x188] sm:$0xff] }
  0x66   : > { %455 = vmatprep.subr.bf16.mxu0 %v454_v26  ;;  %v227_v10 = vld [vmem:[#allocation5 + $0x198] sm:$0xff]  ;;  %v484_v11 = vpack.c.bf16 %v222_v8, %v220_v7  ;;  %v224_v13 = vld [vmem:[#allocation5 + $0x180] sm:$0xff]  ;;  %v226_v14 = vld [vmem:[#allocation5 + $0x190] sm:$0xff] }
  0x67   : > { %v486_v12 = vpack.c.bf16 %v227_v10, %v225_v9  ;;  %v229_v15 = vld [vmem:[#allocation5 + $0x1a8] sm:$0xff]  ;;  %v231_v16 = vld [vmem:[#allocation5 + $0x1b8] sm:$0xff]  ;;  %v488_v17 = vpack.c.bf16 %v226_v14, %v224_v13  ;;  %v228_v19 = vld [vmem:[#allocation5 + $0x1a0] sm:$0xff] }
  0x68   : > { %v490_v18 = vpack.c.bf16 %v231_v16, %v229_v15  ;;  %v230_v20 = vld [vmem:[#allocation5 + $0x1b0] sm:$0xff]  ;;  %v233_v21 = vld [vmem:[#allocation5 + $0x1c8] sm:$0xff]  ;;  %v235_v22 = vld [vmem:[#allocation5 + $0x1d8] sm:$0xff] }
  0x69   : > { %457 = vmatpush1.bf16.msra.mxu0 %v456_v31  ;;  %v492_v23 = vpack.c.bf16 %v230_v20, %v228_v19  ;;  %v494_v24 = vpack.c.bf16 %v235_v22, %v233_v21  ;;  %v232_v25 = vld [vmem:[#allocation5 + $0x1c0] sm:$0xff]  ;;  %v234_v26 = vld [vmem:[#allocation5 + $0x1d0] sm:$0xff]  ;;  %v237_v27 = vld [vmem:[#allocation5 + $0x1e8] sm:$0xff] }
  0x6a   : > { %459 = vmatprep.subr.bf16.mxu0 %v458_v32  ;;  %v239_v28 = vld [vmem:[#allocation5 + $0x1f8] sm:$0xff]  ;;  %v496_v29 = vpack.c.bf16 %v234_v26, %v232_v25  ;;  %v236_v31 = vld [vmem:[#allocation5 + $0x1e0] sm:$0xff]  ;;  %v238_v32 = vld [vmem:[#allocation5 + $0x1f0] sm:$0xff] }
  0x6b   : > { %v498_v30 = vpack.c.bf16 %v239_v28, %v237_v27  ;;  %v500_v33 = vpack.c.bf16 %v238_v32, %v236_v31 }
  0x6d   : > { %461 = vmatpush1.bf16.msra.mxu0 %v460_v37 }
  0x6e   : > { %463 = vmatprep.subr.bf16.mxu0 %v462_v38 }
  0x71   : > { %465 = vmatpush1.bf16.msra.mxu0 %v464_v45 }
  0x72   : > { %467 = vmatprep.subr.bf16.mxu0 %v466_v46 }
  0x75   : > { %469 = vmatpush1.bf16.msra.mxu0 %v468_v51 }
  0x76   : > { %471 = vmatprep.subr.bf16.mxu0 %v470_v52 }
  0x79   : > { %473 = vmatpush1.bf16.msra.mxu0 %v472_v57 }
  0x7a   : > { %475 = vmatprep.subr.bf16.mxu0 %v474_v58 }
  0x7d   : > { %477 = vmatpush1.bf16.msra.mxu0 %v476_v63 }
  0x7e   : > { %479 = vmatprep.subr.bf16.mxu0 %v478_v0 }
  0x81   : > { %481 = vmatpush1.bf16.msra.mxu0 %v480_v5 }
  0x82   : > { %483 = vmatprep.subr.bf16.mxu0 %v482_v6 }
  0x85   : > { %485 = vmatpush1.bf16.msra.mxu0 %v484_v11 }
  0x86   : > { %487 = vmatprep.subr.bf16.mxu0 %v486_v12 }
  0x89   : > { %489 = vmatpush1.bf16.msra.mxu0 %v488_v17 }
  0x8a   : > { %491 = vmatprep.subr.bf16.mxu0 %v490_v18 }
  0x8d   : > { %493 = vmatpush1.bf16.msra.mxu0 %v492_v23 }
  0x8e   : > { %495 = vmatprep.subr.bf16.mxu0 %v494_v24 }
  0x91   : > { %497 = vmatpush1.bf16.msra.mxu0 %v496_v29 }
  0x92   : > { %499 = vmatprep.subr.bf16.mxu0 %v498_v30 }
  0x95   : > { %501 = vmatpush1.bf16.msra.mxu0 %v500_v33 }
  0x98   : > { %308 = vmatmul.mubr.f32.vlgmr.msra.gmra.mrb[0].mxu0 %v865_v41 }
 0x16b   : > { %v309_v34 = vpop.f32.mrb[0].mxu0 }
 0x16c   : > { %v314_v35 = vmax.f32 %v309_v34, 0.0  ;;  %v311_v36 = vpop.f32.mrb[1].mxu0 }
 0x16d   : > { %v315_v37 = vmax.f32 %v311_v36, 0.0 }
 0x16e   : > { %v316_v38 = vmin.f32 %v314_v35, 255.0 }
 0x16f   : > { %v317_v39 = vmin.f32 %v315_v37, 255.0 }
 0x170   : > { %v318_v40 = vfloor.f32 %v316_v38 }
 0x171   : > { %v319_v42 = vfloor.f32 %v317_v39 }
 0x173   : > { %v322_v43 = vcombine.low %v318_v40, %v319_v42 }
 0x175   : > { %324 = vst [vmem:[%s174_s17] sm:$0xff] %v322_v43 }
 0x176   : > { %633 = shalt.err (!%p630_p7)
}
 0x177   : > { %s634_s6 = scalar_lea.hbm %s876_s28, 128  ;;  %s638_s24 = scalar_lea.hbm %s922_s2, 256 }
 0x178   : > { %p635_p9 = scmp.ne.s32.totalorder %s876_s28, %s634_s6  ;;  %p639_p0 = scmp.lt.u32.totalorder %s876_s28, %s922_s2 }
 0x179   : > { %p640_p11 = scmp.lt.u32.totalorder %s638_s24, %s634_s6  ;;  %p642_p4 = scmp.lt.u32.totalorder %s634_s6, %s876_s28 }
 0x17a   : > { %p636_p2 = pnand %p635_p9, %p803_p12 }
 0x17b   : > { %p641_p1 = por %p640_p11, %p639_p0 }
 0x17c   : > { %p637_p5 = pneg %p636_p2 }
 0x17d   : > { %p643_p6 = por %p642_p4, %p641_p1 }
 0x17f   : > { %p644_p8 = pnand %p643_p6, %p637_p5 }
 0x181   : > { %647 = shalt.err (!%p644_p8)
}
 0x182   : > { %508 = dma.vmem_to_hbm [thread:$0]  (%p803_p12), %s878_s27, 128, %s876_s28, %s326_s30  }
 0x183 PF: > { %s352_s26 = sand.u32 1, %s678_s9   ;;  %p937_p10 = scmp.ne.s32.totalorder %s927_s16, 0 }
 0x184   : > { %p938_p13 = scmp.ge.s32.totalorder %s690_s12, 2  ;;  %s353_s19 = scalar_lea.sflag [#allocation4], %s352_s26 }
 0x186   : > { %p519_p3 = pnand %p938_p13, %p937_p10 }
 0x188   : > { %673 = dma.done.wait (!%p519_p3), %s353_s19, 128  }
 0x189   : > { %675 = vsyncadd (!%p519_p3), %s353_s19, 4294967168  ;;  %p16_p7 = scmp.ge.s32.totalorder %s768_s21, 4   ;;  %s939_s9 = smov %s682_s10 }
 0x18a   : > { %s940_s10 = smov %s686_s11  ;;  %s941_s11 = smov %s799_s8 }
 0x18b   : > { %s942_s12 = smov %s768_s21  ;;  %18 = sbr.rel (!%p16_p7) target bundleno = 6 (0x6), region = 77 }
 0x192   :  { %358 = vsyncpa [#allocation3], 1 }
 0x193   :  { %360 = vsyncpa [#allocation3 + $0x1], 1 }
 0x194   :  { %361 = vsyncpa [#allocation6], 1 }
 0x195   :  { %362 = vsyncpa [#allocation4], 1 }
 0x196   :  { %364 = vsyncpa [#allocation4 + $0x1], 1 }

// kernel: tpu_custom_call.1
= control target key start
LH: loop header
LB: loop body
LE: loop exit
PB: predicated region body
PF: predicated region fallthrough
CT: control target
= control target key end

     0   :  { %7 = vsyncpa [#allocation3], 0  ;;  %s920_s0 = inlined_call_operand.hbm [shape: f32[2,4,256], index: 0, kind: input, shape index: {}]   ;;  %s921_s1 = inlined_call_operand.hbm [shape: f32[256,256], index: 1, kind: input, shape index: {}]   ;;  %s922_s2 = inlined_call_operand.hbm [shape: f32[2,4,256], index: 2, kind: output, shape index: {}]  }
   0x1   :  { %9 = vsyncpa [#allocation3 + $0x1], 0 }
   0x2   :  { %10 = vsyncpa [#allocation6], 0 }
   0x3   :  { %11 = vsyncpa [#allocation4], 0 }
   0x4   :  { %13 = vsyncpa [#allocation4 + $0x1], 0  ;;  %s712_s9 = smov 0   ;;  %s714_s10 = smov 0  }
   0x5   :  { %s716_s11 = smov 0   ;;  %s718_s12 = smov 0  }
   0x6 LB: > { %s733_s13 = sadd.s32 4294967295, %s690_s12   ;;  %s420_s14 = sadd.s32 4294967294, %s690_s12   ;;  %s690_s12 = sphi %s718_s12, %s942_s12   ;;  %s686_s11 = sphi %s716_s11, %s941_s11   ;;  %s682_s10 = sphi %s714_s10, %s940_s10   ;;  %s678_s9 = sphi %s712_s9, %s939_s9  }
   0x7   : > { %p39_p0 = scmp.ne.s32.totalorder %s682_s10, %s678_s9  ;;  %p923_p1 = scmp.eq.s32.totalorder %s733_s13, 0 }
   0x8   : > { %p90_p3 = scmp.eq.s32.totalorder %s420_s14, 1  ;;  %p421_p5 = scmp.ge.s32.totalorder %s690_s12, 1 }
   0x9   : > { %p742_p4 = por %p923_p1, %p39_p0  ;;  %p97_p7 = scmp.lt.s32.totalorder %s690_s12, 3 }
   0xa   : > { %p747_p6 = por %p90_p3, %p39_p0  ;;  %s692_s18 = smov [#allocation5]  }
   0xb   : > { %s926_s15 = scalar_select %p742_p4, 1, 0 }
   0xc   : > { %s927_s16 = scalar_select %p747_p6, 1, 0 }
   0xd   : > { %p752_p8 = pnand %p421_p5, %p97_p7  ;;  %s109_s19 = sshll.u32 %s692_s18, 4  ;;  %s756_s19 = int_to_ptr.vmem [resolvable:$true] %s109_s19 }
   0xe   : > { %s768_s21 = sadd.s32 1, %s690_s12   ;;  %s26_s22 = sadd.s32 1, %s686_s11 }
   0xf   : > { %s928_s17 = scalar_select %p752_p8, 1, 0 }
  0x10   : > { %p510_p9 = pneg %p752_p8  ;;  %s23_s23 = ssub.s32 %s690_s12, %s768_s21 }
  0x11   : > { %s562_s26 = scalar_lea.hbm %s921_s1, 8192 }
  0x12   : > { %p763_p11 = pnand %p510_p9, %p923_p1  ;;  %p563_p12 = scmp.ne.s32.totalorder %s921_s1, %s562_s26 }
  0x13   : > { %p569_p5 = scmp.lt.u32.totalorder %s562_s26, %s921_s1 }
  0x14   : > { %p564_p13 = pneg %p763_p11 }
  0x16   : > { %p565_p0 = pnand %p564_p13, %p563_p12 }
  0x18   : > { %p566_p3 = pneg %p565_p0 }
  0x1a   : > { %p571_p7 = pnand %p569_p5, %p566_p3 }
  0x1c   : > { %574 = shalt.err (!%p571_p7)
}
  0x1d   : > { %s575_s3 = scalar_lea.vmem %s756_s19, 8192  ;;  %p583_p2 = scmp.lt.s32.totalorder %s756_s19, %s756_s19 }
  0x1e   : > { %p576_p9 = scmp.ne.s32.totalorder %s756_s19, %s575_s3  ;;  %p584_p6 = scmp.lt.s32.totalorder %s575_s3, %s575_s3 }
  0x20   : > { %p578_p10 = pnand %p576_p9, %p564_p13  ;;  %p585_p4 = por %p584_p6, %p583_p2 }
  0x22   : > { %p579_p1 = pneg %p578_p10 }
  0x24   : > { %p586_p8 = pnand %p585_p4, %p579_p1 }
  0x26   : > { %589 = shalt.err (!%p586_p8)
}
  0x27   : > { %s693_s4 = smov 256   ;;  %s694_s5 = smov 16  }
  0x28   : > { %513 = dma.hbm_to_vmem [thread:$0]  (!%p763_p11), %s921_s1, 8192, %s756_s19, [#allocation6], %s693_s4, %s693_s4, %s694_s5  }
  0x29   : > { %p24_p2 = scmp.eq.s32.totalorder %s23_s23, 0  ;;  %p33_p1 = scmp.ne.s32.totalorder %s686_s11, %s682_s10 }
  0x2a   : > { %p34_p4 = scmp.eq.s32.totalorder %s690_s12, 0  ;;  %p523_p6 = scmp.lt.s32.totalorder %s690_s12, 2 }
  0x2b   : > { %s799_s8 = scalar_select %p24_p2, %s686_s11, %s26_s22  }
  0x2c   : > { %p35_p8 = por %p34_p4, %p33_p1  ;;  %p930_p10 = scmp.eq.s32.totalorder %s733_s13, 1 }
  0x2d   : > { %s123_s18 = sand.u32 1, %s686_s11   ;;  %s436_s24 = sshll.u32 %s690_s12, 7 }
  0x2e   : > { %p803_p12 = por %p930_p10, %p33_p1  ;;  %s424_s25 = sshll.u32 %s123_s18, 3 }
  0x2f   : > { %s812_s27 = scalar_lea.hbm %s920_s0, %s436_s24  ;;  %s127_s19 = scalar_lea.vmem [#allocation2], %s424_s25 }
  0x30   : > { %s135_s22 = sshll.u32 %s127_s19, 4  ;;  %p814_p11 = pnand %p523_p6, %p35_p8  ;;  %s818_s22 = int_to_ptr.vmem [resolvable:$true] %s135_s22 }
  0x31   : > { %s124_s28 = scalar_lea.sflag [#allocation3], %s123_s18  ;;  %s590_s29 = scalar_lea.hbm %s812_s27, 128 }
  0x32   : > { %p591_p13 = scmp.ne.s32.totalorder %s812_s27, %s590_s29  ;;  %p592_p0 = pneg %p814_p11 }
  0x33   : > { %s595_s4 = scalar_lea.hbm %s920_s0, 256  ;;  %p596_p7 = scmp.lt.u32.totalorder %s812_s27, %s920_s0 }
  0x34   : > { %p593_p3 = pnand %p592_p0, %p591_p13  ;;  %p597_p9 = scmp.lt.u32.totalorder %s595_s4, %s590_s29 }
  0x35   : > { %p599_p1 = scmp.lt.u32.totalorder %s590_s29, %s812_s27 }
  0x36   : > { %p594_p5 = pneg %p593_p3  ;;  %p598_p2 = por %p597_p9, %p596_p7 }
  0x38   : > { %p600_p4 = por %p599_p1, %p598_p2 }
  0x3a   : > { %p601_p6 = pnand %p600_p4, %p594_p5 }
  0x3c   : > { %604 = shalt.err (!%p601_p6)
}
  0x3d   : > { %s605_s7 = scalar_lea.vmem %s818_s22, 128  ;;  %s695_s18 = smov [#allocation2]  }
  0x3e   : > { %p606_p8 = scmp.ne.s32.totalorder %s818_s22, %s605_s7  ;;  %s610_s24 = sshll.u32 %s695_s18, 4  ;;  %s611_s24 = int_to_ptr.vmem [resolvable:$false] %s610_s24 }
  0x3f   : > { %s612_s25 = scalar_lea.vmem %s611_s24, 256  ;;  %p613_p3 = scmp.lt.s32.totalorder %s818_s22, %s611_s24 }
  0x40   : > { %p608_p10 = pnand %p606_p8, %p592_p0  ;;  %p614_p7 = scmp.lt.s32.totalorder %s612_s25, %s605_s7 }
  0x42   : > { %p609_p13 = pneg %p608_p10  ;;  %p615_p9 = por %p614_p7, %p613_p3 }
  0x44   : > { %p616_p2 = pnand %p615_p9, %p609_p13 }
  0x46   : > { %619 = shalt.err (!%p616_p2)
}
  0x47   : > { %517 = dma.hbm_to_vmem [thread:$0]  (!%p814_p11), %s812_s27, 128, %s818_s22, %s124_s28  }
  0x48   : > { %p933_p5 = scmp.ne.s32.totalorder %s928_s17, 0 }
  0x49   : > { %s848_s20 = sand.u32 (!%p933_p5), 1, %s682_s10   ;;  %p934_p0 = scmp.ne.s32.totalorder (!%p933_p5), %s926_s15, 0 }
  0x4a   : > { %144 = sbr.rel (%p933_p5) target bundleno = 387 (0x183), region = 28  ;;  %s428_s26 = sshll.u32 (!%p933_p5), %s848_s20, 3 }
  0x4b   : > { %s147_s19 = scalar_lea.sflag (!%p933_p5), [#allocation3], %s848_s20  ;;  %s854_s29 = scalar_lea.vmem (!%p933_p5), [#allocation2], %s428_s26 }
  0x51   : > { %665 = dma.done.wait (%p934_p0), %s147_s19, 128  }
  0x52   : > { %667 = vsyncadd (%p934_p0), %s147_s19, 4294967168  ;;  %p935_p11 = scmp.eq.s32.totalorder %s733_s13, 0 }
  0x54   : > { %669 = dma.done.wait (%p935_p11), [#allocation6], 8192   ;;  %p936_p1 = pmov %p935_p11 }
  0x55   : > { %v177_v0 = vld [vmem:[#allocation5 + $0x8] sm:$0xff]  ;;  %v179_v1 = vld [vmem:[#allocation5 + $0x18] sm:$0xff]  ;;  %v176_v2 = vld [vmem:[#allocation5] sm:$0xff]  ;;  %s437_s15 = sshll.u32 %s733_s13, 7  ;;  %s174_s17 = scalar_lea.vmem [#allocation7], %s428_s26 }
  0x56   : > { %671 = vsyncadd (%p936_p1), [#allocation6], 4294959104  ;;  %v438_v3 = vpack.c.bf16 %v179_v1, %v177_v0  ;;  %v178_v4 = vld [vmem:[#allocation5 + $0x10] sm:$0xff]  ;;  %v181_v5 = vld [vmem:[#allocation5 + $0x28] sm:$0xff]  ;;  %s340_s27 = sshll.u32 %s174_s17, 4  ;;  %s876_s28 = scalar_lea.hbm %s922_s2, %s437_s15  ;;  %s878_s27 = int_to_ptr.vmem [resolvable:$true] %s340_s27 }
  0x57   : > { %v183_v6 = vld [vmem:[#allocation5 + $0x38] sm:$0xff]  ;;  %v440_v7 = vpack.c.bf16 %v178_v4, %v176_v2  ;;  %v180_v9 = vld [vmem:[#allocation5 + $0x20] sm:$0xff]  ;;  %v182_v10 = vld [vmem:[#allocation5 + $0x30] sm:$0xff]  ;;  %s326_s30 = scalar_lea.sflag [#allocation4], %s848_s20  ;;  %s620_s3 = scalar_lea.vmem %s878_s27, 128 }
  0x58   : > { %v442_v8 = vpack.c.bf16 %v183_v6, %v181_v5  ;;  %v185_v11 = vld [vmem:[#allocation5 + $0x48] sm:$0xff]  ;;  %439 = vmatprep.subr.bf16.mxu0 %v438_v3  ;;  %v187_v12 = vld [vmem:[#allocation5 + $0x58] sm:$0xff]  ;;  %v444_v13 = vpack.c.bf16 %v182_v10, %v180_v9  ;;  %v184_v15 = vld [vmem:[#allocation5 + $0x40] sm:$0xff]  ;;  %p621_p4 = scmp.ne.s32.totalorder %s878_s27, %s620_s3  ;;  %s696_s13 = smov [#allocation7]  }
  0x59   : > { %441 = vmatpush1.bf16.msra.mxu0 %v440_v7  ;;  %v446_v14 = vpack.c.bf16 %v187_v12, %v185_v11  ;;  %v186_v16 = vld [vmem:[#allocation5 + $0x50] sm:$0xff]  ;;  %v189_v17 = vld [vmem:[#allocation5 + $0x68] sm:$0xff]  ;;  %v191_v18 = vld [vmem:[#allocation5 + $0x78] sm:$0xff]  ;;  %s624_s4 = sshll.u32 %s696_s13, 4  ;;  %s625_s4 = int_to_ptr.vmem [resolvable:$false] %s624_s4 }
  0x5a   : > { %443 = vmatprep.subr.bf16.mxu0 %v442_v8  ;;  %v448_v19 = vpack.c.bf16 %v186_v16, %v184_v15  ;;  %v450_v20 = vpack.c.bf16 %v191_v18, %v189_v17  ;;  %v188_v21 = vld [vmem:[#allocation5 + $0x60] sm:$0xff]  ;;  %v190_v22 = vld [vmem:[#allocation5 + $0x70] sm:$0xff]  ;;  %v193_v23 = vld [vmem:[#allocation5 + $0x88] sm:$0xff]  ;;  %p622_p6 = pnand %p621_p4, %p803_p12  ;;  %s626_s5 = scalar_lea.vmem %s625_s4, 256 }
  0x5b   : > { %v195_v24 = vld [vmem:[#allocation5 + $0x98] sm:$0xff]  ;;  %v452_v25 = vpack.c.bf16 %v190_v22, %v188_v21  ;;  %v192_v27 = vld [vmem:[#allocation5 + $0x80] sm:$0xff]  ;;  %v194_v28 = vld [vmem:[#allocation5 + $0x90] sm:$0xff]  ;;  %p627_p10 = scmp.lt.s32.totalorder %s878_s27, %s625_s4  ;;  %p628_p13 = scmp.lt.s32.totalorder %s626_s5, %s620_s3 }
  0x5c   : > { %v454_v26 = vpack.c.bf16 %v195_v24, %v193_v23  ;;  %v197_v29 = vld [vmem:[#allocation5 + $0xa8] sm:$0xff]  ;;  %v199_v30 = vld [vmem:[#allocation5 + $0xb8] sm:$0xff]  ;;  %v456_v31 = vpack.c.bf16 %v194_v28, %v192_v27  ;;  %v196_v33 = vld [vmem:[#allocation5 + $0xa0] sm:$0xff]  ;;  %p623_p8 = pneg %p622_p6 }
  0x5d   : > { %445 = vmatpush1.bf16.msra.mxu0 %v444_v13  ;;  %v458_v32 = vpack.c.bf16 %v199_v30, %v197_v29  ;;  %v198_v34 = vld [vmem:[#allocation5 + $0xb0] sm:$0xff]  ;;  %v201_v35 = vld [vmem:[#allocation5 + $0xc8] sm:$0xff]  ;;  %v203_v36 = vld [vmem:[#allocation5 + $0xd8] sm:$0xff]  ;;  %p629_p3 = por %p628_p13, %p627_p10 }
  0x5e   : > { %447 = vmatprep.subr.bf16.mxu0 %v446_v14  ;;  %v460_v37 = vpack.c.bf16 %v198_v34, %v196_v33  ;;  %v462_v38 = vpack.c.bf16 %v203_v36, %v201_v35  ;;  %v200_v39 = vld [vmem:[#allocation5 + $0xc0] sm:$0xff]  ;;  %v202_v40 = vld [vmem:[#allocation5 + $0xd0] sm:$0xff]  ;;  %v205_v42 = vld [vmem:[#allocation5 + $0xe8] sm:$0xff] }
  0x5f   : > { %v865_v41 = vld [vmem:[%s854_s29] sm:$0xff]  ;;  %v464_v45 = vpack.c.bf16 %v202_v40, %v200_v39  ;;  %v204_v47 = vld [vmem:[#allocation5 + $0xe0] sm:$0xff]  ;;  %v209_v49 = vld [vmem:[#allocation5 + $0x108] sm:$0xff]  ;;  %p630_p7 = pnand %p629_p3, %p623_p8 }
  0x60   : > { %v207_v43 = vld [vmem:[#allocation5 + $0xf8] sm:$0xff]  ;;  %v241_v44 = vcombine.high %v865_v41, %v865_v41  ;;  %v206_v48 = vld [vmem:[#allocation5 + $0xf0] sm:$0xff]  ;;  %v208_v53 = vld [vmem:[#allocation5 + $0x100] sm:$0xff] }
  0x61   : > { %449 = vmatpush1.bf16.msra.mxu0 %v448_v19  ;;  %v466_v46 = vpack.c.bf16 %v207_v43, %v205_v42  ;;  %v211_v50 = vld [vmem:[#allocation5 + $0x118] sm:$0xff]  ;;  %v468_v51 = vpack.c.bf16 %v206_v48, %v204_v47  ;;  %v210_v54 = vld [vmem:[#allocation5 + $0x110] sm:$0xff]  ;;  %v213_v55 = vld [vmem:[#allocation5 + $0x128] sm:$0xff] }
  0x62   : > { %451 = vmatprep.subr.bf16.mxu0 %v450_v20  ;;  %307 = vmatprep.mubr.f32.mxu0 %v241_v44  ;;  %v470_v52 = vpack.c.bf16 %v211_v50, %v209_v49  ;;  %v215_v56 = vld [vmem:[#allocation5 + $0x138] sm:$0xff]  ;;  %v472_v57 = vpack.c.bf16 %v210_v54, %v208_v53  ;;  %v212_v59 = vld [vmem:[#allocation5 + $0x120] sm:$0xff]  ;;  %v214_v60 = vld [vmem:[#allocation5 + $0x130] sm:$0xff] }
  0x63   : > { %v474_v58 = vpack.c.bf16 %v215_v56, %v213_v55  ;;  %v217_v61 = vld [vmem:[#allocation5 + $0x148] sm:$0xff]  ;;  %v219_v62 = vld [vmem:[#allocation5 + $0x158] sm:$0xff]  ;;  %v476_v63 = vpack.c.bf16 %v214_v60, %v212_v59  ;;  %v216_v1 = vld [vmem:[#allocation5 + $0x140] sm:$0xff] }
  0x64   : > { %v478_v0 = vpack.c.bf16 %v219_v62, %v217_v61  ;;  %v218_v2 = vld [vmem:[#allocation5 + $0x150] sm:$0xff]  ;;  %v221_v3 = vld [vmem:[#allocation5 + $0x168] sm:$0xff]  ;;  %v223_v4 = vld [vmem:[#allocation5 + $0x178] sm:$0xff] }
  0x65   : > { %453 = vmatpush1.bf16.msra.mxu0 %v452_v25  ;;  %v480_v5 = vpack.c.bf16 %v218_v2, %v216_v1  ;;  %v482_v6 = vpack.c.bf16 %v223_v4, %v221_v3  ;;  %v220_v7 = vld [vmem:[#allocation5 + $0x160] sm:$0xff]  ;;  %v222_v8 = vld [vmem:[#allocation5 + $0x170] sm:$0xff]  ;;  %v225_v9 = vld [vmem:[#allocation5 + $0x188] sm:$0xff] }
  0x66   : > { %455 = vmatprep.subr.bf16.mxu0 %v454_v26  ;;  %v227_v10 = vld [vmem:[#allocation5 + $0x198] sm:$0xff]  ;;  %v484_v11 = vpack.c.bf16 %v222_v8, %v220_v7  ;;  %v224_v13 = vld [vmem:[#allocation5 + $0x180] sm:$0xff]  ;;  %v226_v14 = vld [vmem:[#allocation5 + $0x190] sm:$0xff] }
  0x67   : > { %v486_v12 = vpack.c.bf16 %v227_v10, %v225_v9  ;;  %v229_v15 = vld [vmem:[#allocation5 + $0x1a8] sm:$0xff]  ;;  %v231_v16 = vld [vmem:[#allocation5 + $0x1b8] sm:$0xff]  ;;  %v488_v17 = vpack.c.bf16 %v226_v14, %v224_v13  ;;  %v228_v19 = vld [vmem:[#allocation5 + $0x1a0] sm:$0xff] }
  0x68   : > { %v490_v18 = vpack.c.bf16 %v231_v16, %v229_v15  ;;  %v230_v20 = vld [vmem:[#allocation5 + $0x1b0] sm:$0xff]  ;;  %v233_v21 = vld [vmem:[#allocation5 + $0x1c8] sm:$0xff]  ;;  %v235_v22 = vld [vmem:[#allocation5 + $0x1d8] sm:$0xff] }
  0x69   : > { %457 = vmatpush1.bf16.msra.mxu0 %v456_v31  ;;  %v492_v23 = vpack.c.bf16 %v230_v20, %v228_v19  ;;  %v494_v24 = vpack.c.bf16 %v235_v22, %v233_v21  ;;  %v232_v25 = vld [vmem:[#allocation5 + $0x1c0] sm:$0xff]  ;;  %v234_v26 = vld [vmem:[#allocation5 + $0x1d0] sm:$0xff]  ;;  %v237_v27 = vld [vmem:[#allocation5 + $0x1e8] sm:$0xff] }
  0x6a   : > { %459 = vmatprep.subr.bf16.mxu0 %v458_v32  ;;  %v239_v28 = vld [vmem:[#allocation5 + $0x1f8] sm:$0xff]  ;;  %v496_v29 = vpack.c.bf16 %v234_v26, %v232_v25  ;;  %v236_v31 = vld [vmem:[#allocation5 + $0x1e0] sm:$0xff]  ;;  %v238_v32 = vld [vmem:[#allocation5 + $0x1f0] sm:$0xff] }
  0x6b   : > { %v498_v30 = vpack.c.bf16 %v239_v28, %v237_v27  ;;  %v500_v33 = vpack.c.bf16 %v238_v32, %v236_v31 }
  0x6d   : > { %461 = vmatpush1.bf16.msra.mxu0 %v460_v37 }
  0x6e   : > { %463 = vmatprep.subr.bf16.mxu0 %v462_v38 }
  0x71   : > { %465 = vmatpush1.bf16.msra.mxu0 %v464_v45 }
  0x72   : > { %467 = vmatprep.subr.bf16.mxu0 %v466_v46 }
  0x75   : > { %469 = vmatpush1.bf16.msra.mxu0 %v468_v51 }
  0x76   : > { %471 = vmatprep.subr.bf16.mxu0 %v470_v52 }
  0x79   : > { %473 = vmatpush1.bf16.msra.mxu0 %v472_v57 }
  0x7a   : > { %475 = vmatprep.subr.bf16.mxu0 %v474_v58 }
  0x7d   : > { %477 = vmatpush1.bf16.msra.mxu0 %v476_v63 }
  0x7e   : > { %479 = vmatprep.subr.bf16.mxu0 %v478_v0 }
  0x81   : > { %481 = vmatpush1.bf16.msra.mxu0 %v480_v5 }
  0x82   : > { %483 = vmatprep.subr.bf16.mxu0 %v482_v6 }
  0x85   : > { %485 = vmatpush1.bf16.msra.mxu0 %v484_v11 }
  0x86   : > { %487 = vmatprep.subr.bf16.mxu0 %v486_v12 }
  0x89   : > { %489 = vmatpush1.bf16.msra.mxu0 %v488_v17 }
  0x8a   : > { %491 = vmatprep.subr.bf16.mxu0 %v490_v18 }
  0x8d   : > { %493 = vmatpush1.bf16.msra.mxu0 %v492_v23 }
  0x8e   : > { %495 = vmatprep.subr.bf16.mxu0 %v494_v24 }
  0x91   : > { %497 = vmatpush1.bf16.msra.mxu0 %v496_v29 }
  0x92   : > { %499 = vmatprep.subr.bf16.mxu0 %v498_v30 }
  0x95   : > { %501 = vmatpush1.bf16.msra.mxu0 %v500_v33 }
  0x98   : > { %308 = vmatmul.mubr.f32.vlgmr.msra.gmra.mrb[0].mxu0 %v865_v41 }
 0x16b   : > { %v309_v34 = vpop.f32.mrb[0].mxu0 }
 0x16c   : > { %v314_v35 = vmax.f32 %v309_v34, 0.0  ;;  %v311_v36 = vpop.f32.mrb[1].mxu0 }
 0x16d   : > { %v315_v37 = vmax.f32 %v311_v36, 0.0 }
 0x16e   : > { %v316_v38 = vmin.f32 %v314_v35, 255.0 }
 0x16f   : > { %v317_v39 = vmin.f32 %v315_v37, 255.0 }
 0x170   : > { %v318_v40 = vfloor.f32 %v316_v38 }
 0x171   : > { %v319_v42 = vfloor.f32 %v317_v39 }
 0x173   : > { %v322_v43 = vcombine.low %v318_v40, %v319_v42 }
 0x175   : > { %324 = vst [vmem:[%s174_s17] sm:$0xff] %v322_v43 }
 0x176   : > { %633 = shalt.err (!%p630_p7)
}
 0x177   : > { %s634_s6 = scalar_lea.hbm %s876_s28, 128  ;;  %s638_s24 = scalar_lea.hbm %s922_s2, 256 }
 0x178   : > { %p635_p9 = scmp.ne.s32.totalorder %s876_s28, %s634_s6  ;;  %p639_p0 = scmp.lt.u32.totalorder %s876_s28, %s922_s2 }
 0x179   : > { %p640_p11 = scmp.lt.u32.totalorder %s638_s24, %s634_s6  ;;  %p642_p4 = scmp.lt.u32.totalorder %s634_s6, %s876_s28 }
 0x17a   : > { %p636_p2 = pnand %p635_p9, %p803_p12 }
 0x17b   : > { %p641_p1 = por %p640_p11, %p639_p0 }
 0x17c   : > { %p637_p5 = pneg %p636_p2 }
 0x17d   : > { %p643_p6 = por %p642_p4, %p641_p1 }
 0x17f   : > { %p644_p8 = pnand %p643_p6, %p637_p5 }
 0x181   : > { %647 = shalt.err (!%p644_p8)
}
 0x182   : > { %508 = dma.vmem_to_hbm [thread:$0]  (%p803_p12), %s878_s27, 128, %s876_s28, %s326_s30  }
 0x183 PF: > { %s352_s26 = sand.u32 1, %s678_s9   ;;  %p937_p10 = scmp.ne.s32.totalorder %s927_s16, 0 }
 0x184   : > { %p938_p13 = scmp.ge.s32.totalorder %s690_s12, 2  ;;  %s353_s19 = scalar_lea.sflag [#allocation4], %s352_s26 }
 0x186   : > { %p519_p3 = pnand %p938_p13, %p937_p10 }
 0x188   : > { %673 = dma.done.wait (!%p519_p3), %s353_s19, 128  }
 0x189   : > { %675 = vsyncadd (!%p519_p3), %s353_s19, 4294967168  ;;  %p16_p7 = scmp.ge.s32.totalorder %s768_s21, 4   ;;  %s939_s9 = smov %s682_s10 }
 0x18a   : > { %s940_s10 = smov %s686_s11  ;;  %s941_s11 = smov %s799_s8 }
 0x18b   : > { %s942_s12 = smov %s768_s21  ;;  %18 = sbr.rel (!%p16_p7) target bundleno = 6 (0x6), region = 77 }
 0x192   :  { %358 = vsyncpa [#allocation3], 1 }
 0x193   :  { %360 = vsyncpa [#allocation3 + $0x1], 1 }
 0x194   :  { %361 = vsyncpa [#allocation6], 1 }
 0x195   :  { %362 = vsyncpa [#allocation4], 1 }
 0x196   :  { %364 = vsyncpa [#allocation4 + $0x1], 1 }

</bundles_post_ra>
